<compile_context>
chip_gen: v6e
topology: v6e:2x2x1
jax: 0.10.0
libtpu: 0.0.40
codegen_flags: <defaults>
</compile_context>

<pallas_src>
import jax
import jax.numpy as jnp
from jax.experimental import pallas as pl
from jax.experimental.pallas import tpu as pltpu


# ----------------------------------------------------------------------------
# Fused kernel
# ----------------------------------------------------------------------------

def _state_tracker_kernel(q_ref, h_ref,
                          wir_ref, wiz_ref, win_ref,
                          whr_ref, whz_ref, whn_ref,
                          br_ref, bz_ref, bin_ref, bhn_ref,
                          wp_ref, bp_ref,
                          ctx_ref, ns_ref,
                          ns_bf16_ref):
    """Fused GRUCell + Linear projection.

    Grid axis j tiles the projection's output (hidden) columns.

    q_ref    [Bp, H]   pooled query representation (f32, resident)
    h_ref    [Bp, S]   previous state (f32, resident)
    w??_ref             per-gate GRU weights (bf16, resident): [H, S] / [S, S]
    b*_ref   [1, S]    per-gate GRU biases (f32, resident)
    wp_ref   [S, TH]   projection weight column tile (bf16, streamed)
    bp_ref   [1, TH]   projection bias column tile (f32, streamed)
    ctx_ref  [Bp, TH]  state_context output tile (f32)
    ns_ref   [Bp, S]   new state output (f32, resident, written at j == 0)
    ns_bf16_ref [Bp,S] scratch: bf16 copy of new state for the MXU
    """
    @pl.when(pl.program_id(0) == 0)
    def _():
        qb = q_ref[...].astype(jnp.bfloat16)
        hb = h_ref[...].astype(jnp.bfloat16)

        # bf16 MXU operands, f32 accumulation.
        gir = jnp.dot(qb, wir_ref[...], preferred_element_type=jnp.float32)
        giz = jnp.dot(qb, wiz_ref[...], preferred_element_type=jnp.float32)
        gin = jnp.dot(qb, win_ref[...], preferred_element_type=jnp.float32)
        ghr = jnp.dot(hb, whr_ref[...], preferred_element_type=jnp.float32)
        ghz = jnp.dot(hb, whz_ref[...], preferred_element_type=jnp.float32)
        ghn = jnp.dot(hb, whn_ref[...], preferred_element_type=jnp.float32)

        # Gate math in f32 (PyTorch nn.GRUCell formulation).
        r = jax.nn.sigmoid(gir + ghr + br_ref[...])
        z = jax.nn.sigmoid(giz + ghz + bz_ref[...])
        n = jnp.tanh(gin + bin_ref[...] + r * (ghn + bhn_ref[...]))

        ns = (1.0 - z) * n + z * h_ref[...]
        ns_ref[...] = ns.astype(ns_ref.dtype)
        ns_bf16_ref[...] = ns.astype(jnp.bfloat16)

    # Projection for this hidden-column tile: ctx = new_state @ W_proj^T + b.
    ctx = jnp.dot(ns_bf16_ref[...], wp_ref[...],
                  preferred_element_type=jnp.float32) + bp_ref[...]
    ctx_ref[...] = ctx.astype(ctx_ref.dtype)


# ----------------------------------------------------------------------------
# Wrapper
# ----------------------------------------------------------------------------

def _pick_tile(dim, target):
    """Largest multiple of 128 that divides `dim` and is <= target, else full dim."""
    if dim <= target or dim % 128 != 0:
        return dim
    t = (min(target, dim) // 128) * 128
    while t > 0:
        if dim % t == 0:
            return t
        t -= 128
    return dim


_COMPILER_PARAMS = pltpu.CompilerParams(
    # GRU runs only at grid step 0 and later steps consume its scratch result,
    # so the grid axis must stay sequential on one core.
    dimension_semantics=("arbitrary",),
    vmem_limit_bytes=48 * 1024 * 1024,
)


def state_tracker_forward(hidden_states, prep, prev_state=None):
    """StateTracker.forward: returns (state_context [B,H], new_state [B,S])."""
    B = hidden_states.shape[0]
    H = prep["hidden_size"]
    S = prep["state_size"]

    # Mean pool over the sequence in plain XLA (read-once data, no VMEM reuse).
    q = jnp.mean(hidden_states.astype(jnp.float32), axis=1)            # [B, H]

    if prev_state is None:
        prev_state = jnp.broadcast_to(prep["init_state"], (B, S))
    prev_state = prev_state.astype(jnp.float32)

    # Pad the batch to the f32 sublane tile (8 rows).
    Bp = ((B + 7) // 8) * 8
    if Bp != B:
        q = jnp.pad(q, ((0, Bp - B), (0, 0)))
        prev_state = jnp.pad(prev_state, ((0, Bp - B), (0, 0)))

    TH = _pick_tile(H, 512)                       # projection column tile
    resident = lambda shape: pl.BlockSpec(shape, lambda j: (0, 0))

    ctx_p, new_state_p = pl.pallas_call(
        _state_tracker_kernel,
        out_shape=(jax.ShapeDtypeStruct((Bp, H), jnp.float32),   # state_context
                   jax.ShapeDtypeStruct((Bp, S), jnp.float32)),  # new_state
        grid=(H // TH,),
        in_specs=[
            resident((Bp, H)),                    # q
            resident((Bp, S)),                    # prev_state
            resident((H, S)), resident((H, S)), resident((H, S)),   # W_ir^T W_iz^T W_in^T
            resident((S, S)), resident((S, S)), resident((S, S)),   # W_hr^T W_hz^T W_hn^T
            resident((1, S)), resident((1, S)),                      # b_r, b_z
            resident((1, S)), resident((1, S)),                      # b_in, b_hn
            pl.BlockSpec((S, TH), lambda j: (0, j)),                 # W_proj^T tile
            pl.BlockSpec((1, TH), lambda j: (0, j)),                 # b_proj tile
        ],
        out_specs=(
            pl.BlockSpec((Bp, TH), lambda j: (0, j)),                # ctx tile
            pl.BlockSpec((Bp, S), lambda j: (0, 0)),                 # new_state (resident)
        ),
        scratch_shapes=[pltpu.VMEM((Bp, S), jnp.bfloat16)],
        compiler_params=_COMPILER_PARAMS,
    )(q, prev_state,
      prep["wir"], prep["wiz"], prep["win"],
      prep["whr"], prep["whz"], prep["whn"],
      prep["b_r"], prep["b_z"], prep["b_in"], prep["b_hn"],
      prep["wp"], prep["bp"])

    return ctx_p[:B], new_state_p[:B]


# ----------------------------------------------------------------------------
# Parameters
# ----------------------------------------------------------------------------

def init_params(key, hidden_size, state_size, dtype=jnp.float32):
    """Synthetic params matching nn.GRUCell / nn.Linear / zero state initializer."""
    H, S = hidden_size, state_size
    ks = jax.random.split(key, 6)
    k = 1.0 / float(S) ** 0.5
    u = lambda kk, shape: jax.random.uniform(kk, shape, dtype, -k, k)
    return {
        "weight_ih": u(ks[0], (3 * S, H)),
        "weight_hh": u(ks[1], (3 * S, S)),
        "bias_ih": u(ks[2], (3 * S,)),
        "bias_hh": u(ks[3], (3 * S,)),
        "w_proj": u(ks[4], (H, S)),
        "b_proj": u(ks[5], (H,)),
        "state_initializer": jnp.zeros((1, S), dtype),
    }


def prepare_params(raw, hidden_size, state_size, compute_dtype=jnp.bfloat16):
    """One-time layout prep: per-gate splits, transposes, bias folding, bf16 cast."""
    H, S = hidden_size, state_size
    Wih, Whh = raw["weight_ih"], raw["weight_hh"]
    bih, bhh = raw["bias_ih"], raw["bias_hh"]

    def gate_t(W, g):           # rows [gS:(g+1)S], transposed to (in x out)
        return W[g * S:(g + 1) * S, :].T

    return {
        "hidden_size": H,
        "state_size": S,
        "wir": gate_t(Wih, 0).astype(compute_dtype),   # [H, S]
        "wiz": gate_t(Wih, 1).astype(compute_dtype),
        "win": gate_t(Wih, 2).astype(compute_dtype),
        "whr": gate_t(Whh, 0).astype(compute_dtype),   # [S, S]
        "whz": gate_t(Whh, 1).astype(compute_dtype),
        "whn": gate_t(Whh, 2).astype(compute_dtype),
        "b_r": (bih[:S] + bhh[:S]).reshape(1, S).astype(jnp.float32),
        "b_z": (bih[S:2 * S] + bhh[S:2 * S]).reshape(1, S).astype(jnp.float32),
        "b_in": bih[2 * S:].reshape(1, S).astype(jnp.float32),
        "b_hn": bhh[2 * S:].reshape(1, S).astype(jnp.float32),
        "wp": raw["w_proj"].T.astype(compute_dtype),   # [S, H]
        "bp": raw["b_proj"].reshape(1, H).astype(jnp.float32),
        "init_state": raw["state_initializer"].astype(jnp.float32),
    }


# ----------------------------------------------------------------------------
# Pure-JAX reference (mirrors the PyTorch module exactly, all f32)
# ----------------------------------------------------------------------------

def _reference_forward(hidden_states, raw, prev_state=None):
    B = hidden_states.shape[0]
    S = raw["weight_hh"].shape[1]
    q = jnp.mean(hidden_states, axis=1)
    if prev_state is None:
        prev_state = jnp.broadcast_to(raw["state_initializer"], (B, S))
    gi = q @ raw["weight_ih"].T + raw["bias_ih"]
    gh = prev_state @ raw["weight_hh"].T + raw["bias_hh"]
    ir, iz, inn = gi[:, :S], gi[:, S:2 * S], gi[:, 2 * S:]
    hr, hz, hn = gh[:, :S], gh[:, S:2 * S], gh[:, 2 * S:]
    r = jax.nn.sigmoid(ir + hr)
    z = jax.nn.sigmoid(iz + hz)
    n = jnp.tanh(inn + r * hn)
    new_state = (1.0 - z) * n + z * prev_state
    ctx = new_state @ raw["w_proj"].T + raw["b_proj"]
    return ctx, new_state


# ----------------------------------------------------------------------------

if __name__ == "__main__":
    B, SEQ, H, STATE = 2, 8, 32, 64

    key = jax.random.PRNGKey(0)
    k_x, k_p = jax.random.split(key)
    x = jax.random.normal(k_x, (B, SEQ, H), jnp.float32)
    raw = init_params(k_p, H, STATE)
    prep = prepare_params(raw, H, STATE)

    # Turn 1: no previous state (uses the learned initializer).
    ctx1, st1 = state_tracker_forward(x, prep, prev_state=None)
    # Turn 2: feed the updated state back (multi-turn usage).
    ctx2, st2 = state_tracker_forward(x, prep, prev_state=st1)
    jax.block_until_ready((ctx1, st1, ctx2, st2))

    ref_ctx1, ref_st1 = _reference_forward(x, raw, None)
    ref_ctx2, ref_st2 = _reference_forward(x, raw, ref_st1)

    assert ctx1.shape == (B, H) and st1.shape == (B, STATE)
    assert ctx2.shape == (B, H) and st2.shape == (B, STATE)
    # bf16 MXU operands with f32 accumulation -> loosened tolerance vs f32 ref.
    tol = dict(atol=2e-2, rtol=2e-2)
    assert jnp.allclose(st1, ref_st1, **tol)
    assert jnp.allclose(ctx1, ref_ctx1, **tol)
    assert jnp.allclose(st2, ref_st2, **tol)
    assert jnp.allclose(ctx2, ref_ctx2, **tol)

    print("KERNEL_OK")
</pallas_src>

<mosaic_0001>
module attributes {stable_mosaic.version = 11 : i64} {
  func.func @_state_tracker_kernel(%arg0: i32, %arg1: memref<8x32xf32, #tpu.memory_space<vmem>>, %arg2: memref<8x64xf32, #tpu.memory_space<vmem>>, %arg3: memref<32x64xbf16, #tpu.memory_space<vmem>>, %arg4: memref<32x64xbf16, #tpu.memory_space<vmem>>, %arg5: memref<32x64xbf16, #tpu.memory_space<vmem>>, %arg6: memref<64x64xbf16, #tpu.memory_space<vmem>>, %arg7: memref<64x64xbf16, #tpu.memory_space<vmem>>, %arg8: memref<64x64xbf16, #tpu.memory_space<vmem>>, %arg9: memref<1x64xf32, #tpu.memory_space<vmem>>, %arg10: memref<1x64xf32, #tpu.memory_space<vmem>>, %arg11: memref<1x64xf32, #tpu.memory_space<vmem>>, %arg12: memref<1x64xf32, #tpu.memory_space<vmem>>, %arg13: memref<64x32xbf16, #tpu.memory_space<vmem>>, %arg14: memref<1x32xf32, #tpu.memory_space<vmem>>, %arg15: memref<8x32xf32, #tpu.memory_space<vmem>>, %arg16: memref<8x64xf32, #tpu.memory_space<vmem>>, %arg17: memref<8x64xbf16, #tpu.memory_space<vmem>>) attributes {dimension_semantics = [#tpu.dimension_semantics<arbitrary>], iteration_bounds = array<i64: 1>, scalar_prefetch = 0 : i64, scratch_operands = 1 : i64, tpu.core_type = #tpu.core_type<tc>, window_params = [{pipeline_mode = #tpu.pipeline_mode<synchronous>, transform_indices = @transform_0, window_bounds = array<i64: 8, 32>}, {pipeline_mode = #tpu.pipeline_mode<synchronous>, transform_indices = @transform_1, window_bounds = array<i64: 8, 64>}, {pipeline_mode = #tpu.pipeline_mode<synchronous>, transform_indices = @transform_2, window_bounds = array<i64: 32, 64>}, {pipeline_mode = #tpu.pipeline_mode<synchronous>, transform_indices = @transform_3, window_bounds = array<i64: 32, 64>}, {pipeline_mode = #tpu.pipeline_mode<synchronous>, transform_indices = @transform_4, window_bounds = array<i64: 32, 64>}, {pipeline_mode = #tpu.pipeline_mode<synchronous>, transform_indices = @transform_5, window_bounds = array<i64: 64, 64>}, {pipeline_mode = #tpu.pipeline_mode<synchronous>, transform_indices = @transform_6, window_bounds = array<i64: 64, 64>}, {pipeline_mode = #tpu.pipeline_mode<synchronous>, transform_indices = @transform_7, window_bounds = array<i64: 64, 64>}, {pipeline_mode = #tpu.pipeline_mode<synchronous>, transform_indices = @transform_8, window_bounds = array<i64: 1, 64>}, {pipeline_mode = #tpu.pipeline_mode<synchronous>, transform_indices = @transform_9, window_bounds = array<i64: 1, 64>}, {pipeline_mode = #tpu.pipeline_mode<synchronous>, transform_indices = @transform_10, window_bounds = array<i64: 1, 64>}, {pipeline_mode = #tpu.pipeline_mode<synchronous>, transform_indices = @transform_11, window_bounds = array<i64: 1, 64>}, {transform_indices = @transform_12, window_bounds = array<i64: 64, 32>}, {transform_indices = @transform_13, window_bounds = array<i64: 1, 32>}, {transform_indices = @transform_14, window_bounds = array<i64: 8, 32>}, {pipeline_mode = #tpu.pipeline_mode<synchronous>, transform_indices = @transform_15, window_bounds = array<i64: 8, 64>}]} {
    %c0_i32 = arith.constant 0 : i32
    %0 = arith.cmpi eq, %arg0, %c0_i32 : i32
    %1 = arith.extui %0 : i1 to i32
    %c0_i32_0 = arith.constant 0 : i32
    %2 = arith.cmpi ne, %1, %c0_i32_0 : i32
    scf.if %2 {
      %c0_8 = arith.constant 0 : index
      %c0_9 = arith.constant 0 : index
      %10 = vector.load %arg1[%c0_8, %c0_9] : memref<8x32xf32, #tpu.memory_space<vmem>>, vector<8x32xf32>
      %11 = arith.truncf %10 : vector<8x32xf32> to vector<8x32xbf16>
      %c0_10 = arith.constant 0 : index
      %c0_11 = arith.constant 0 : index
      %12 = vector.load %arg2[%c0_10, %c0_11] : memref<8x64xf32, #tpu.memory_space<vmem>>, vector<8x64xf32>
      %13 = arith.truncf %12 : vector<8x64xf32> to vector<8x64xbf16>
      %c0_12 = arith.constant 0 : index
      %c0_13 = arith.constant 0 : index
      %14 = vector.load %arg3[%c0_12, %c0_13] : memref<32x64xbf16, #tpu.memory_space<vmem>>, vector<32x64xbf16>
      %cst_14 = arith.constant dense<0.000000e+00> : vector<8x64xf32>
      %15 = tpu.matmul %11, %14, %cst_14 {dimension_numbers = #tpu.dot_dimension_numbers<[1], [0], [0], [1], [0, 0, 1, 1], [], []>} : vector<8x32xbf16>, vector<32x64xbf16>, vector<8x64xf32> -> vector<8x64xf32>
      %c0_15 = arith.constant 0 : index
      %c0_16 = arith.constant 0 : index
      %16 = vector.load %arg4[%c0_15, %c0_16] : memref<32x64xbf16, #tpu.memory_space<vmem>>, vector<32x64xbf16>
      %cst_17 = arith.constant dense<0.000000e+00> : vector<8x64xf32>
      %17 = tpu.matmul %11, %16, %cst_17 {dimension_numbers = #tpu.dot_dimension_numbers<[1], [0], [0], [1], [0, 0, 1, 1], [], []>} : vector<8x32xbf16>, vector<32x64xbf16>, vector<8x64xf32> -> vector<8x64xf32>
      %c0_18 = arith.constant 0 : index
      %c0_19 = arith.constant 0 : index
      %18 = vector.load %arg5[%c0_18, %c0_19] : memref<32x64xbf16, #tpu.memory_space<vmem>>, vector<32x64xbf16>
      %cst_20 = arith.constant dense<0.000000e+00> : vector<8x64xf32>
      %19 = tpu.matmul %11, %18, %cst_20 {dimension_numbers = #tpu.dot_dimension_numbers<[1], [0], [0], [1], [0, 0, 1, 1], [], []>} : vector<8x32xbf16>, vector<32x64xbf16>, vector<8x64xf32> -> vector<8x64xf32>
      %c0_21 = arith.constant 0 : index
      %c0_22 = arith.constant 0 : index
      %20 = vector.load %arg6[%c0_21, %c0_22] : memref<64x64xbf16, #tpu.memory_space<vmem>>, vector<64x64xbf16>
      %cst_23 = arith.constant dense<0.000000e+00> : vector<8x64xf32>
      %21 = tpu.matmul %13, %20, %cst_23 {dimension_numbers = #tpu.dot_dimension_numbers<[1], [0], [0], [1], [0, 0, 1, 1], [], []>} : vector<8x64xbf16>, vector<64x64xbf16>, vector<8x64xf32> -> vector<8x64xf32>
      %c0_24 = arith.constant 0 : index
      %c0_25 = arith.constant 0 : index
      %22 = vector.load %arg7[%c0_24, %c0_25] : memref<64x64xbf16, #tpu.memory_space<vmem>>, vector<64x64xbf16>
      %cst_26 = arith.constant dense<0.000000e+00> : vector<8x64xf32>
      %23 = tpu.matmul %13, %22, %cst_26 {dimension_numbers = #tpu.dot_dimension_numbers<[1], [0], [0], [1], [0, 0, 1, 1], [], []>} : vector<8x64xbf16>, vector<64x64xbf16>, vector<8x64xf32> -> vector<8x64xf32>
      %c0_27 = arith.constant 0 : index
      %c0_28 = arith.constant 0 : index
      %24 = vector.load %arg8[%c0_27, %c0_28] : memref<64x64xbf16, #tpu.memory_space<vmem>>, vector<64x64xbf16>
      %cst_29 = arith.constant dense<0.000000e+00> : vector<8x64xf32>
      %25 = tpu.matmul %13, %24, %cst_29 {dimension_numbers = #tpu.dot_dimension_numbers<[1], [0], [0], [1], [0, 0, 1, 1], [], []>} : vector<8x64xbf16>, vector<64x64xbf16>, vector<8x64xf32> -> vector<8x64xf32>
      %26 = arith.addf %15, %21 : vector<8x64xf32>
      %c0_30 = arith.constant 0 : index
      %c0_31 = arith.constant 0 : index
      %27 = vector.load %arg9[%c0_30, %c0_31] : memref<1x64xf32, #tpu.memory_space<vmem>>, vector<1x64xf32>
      %28 = vector.broadcast %27 : vector<1x64xf32> to vector<8x64xf32>
      %29 = arith.addf %26, %28 : vector<8x64xf32>
      %30 = arith.negf %29 : vector<8x64xf32>
      %31 = math.exp %30 : vector<8x64xf32>
      %cst_32 = arith.constant 1.000000e+00 : f32
      %32 = vector.broadcast %cst_32 : f32 to vector<8x64xf32>
      %33 = arith.addf %32, %31 : vector<8x64xf32>
      %34 = arith.divf %32, %33 : vector<8x64xf32>
      %35 = arith.addf %17, %23 : vector<8x64xf32>
      %c0_33 = arith.constant 0 : index
      %c0_34 = arith.constant 0 : index
      %36 = vector.load %arg10[%c0_33, %c0_34] : memref<1x64xf32, #tpu.memory_space<vmem>>, vector<1x64xf32>
      %37 = vector.broadcast %36 : vector<1x64xf32> to vector<8x64xf32>
      %38 = arith.addf %35, %37 : vector<8x64xf32>
      %39 = arith.negf %38 : vector<8x64xf32>
      %40 = math.exp %39 : vector<8x64xf32>
      %cst_35 = arith.constant 1.000000e+00 : f32
      %41 = vector.broadcast %cst_35 : f32 to vector<8x64xf32>
      %42 = arith.addf %41, %40 : vector<8x64xf32>
      %43 = arith.divf %41, %42 : vector<8x64xf32>
      %c0_36 = arith.constant 0 : index
      %c0_37 = arith.constant 0 : index
      %44 = vector.load %arg11[%c0_36, %c0_37] : memref<1x64xf32, #tpu.memory_space<vmem>>, vector<1x64xf32>
      %45 = vector.broadcast %44 : vector<1x64xf32> to vector<8x64xf32>
      %46 = arith.addf %19, %45 : vector<8x64xf32>
      %c0_38 = arith.constant 0 : index
      %c0_39 = arith.constant 0 : index
      %47 = vector.load %arg12[%c0_38, %c0_39] : memref<1x64xf32, #tpu.memory_space<vmem>>, vector<1x64xf32>
      %48 = vector.broadcast %47 : vector<1x64xf32> to vector<8x64xf32>
      %49 = arith.addf %25, %48 : vector<8x64xf32>
      %50 = arith.mulf %34, %49 : vector<8x64xf32>
      %51 = arith.addf %46, %50 : vector<8x64xf32>
      %52 = math.tanh %51 : vector<8x64xf32>
      %cst_40 = arith.constant 1.000000e+00 : f32
      %53 = vector.broadcast %cst_40 : f32 to vector<8x64xf32>
      %54 = arith.subf %53, %43 : vector<8x64xf32>
      %55 = arith.mulf %54, %52 : vector<8x64xf32>
      %c0_41 = arith.constant 0 : index
      %c0_42 = arith.constant 0 : index
      %56 = vector.load %arg2[%c0_41, %c0_42] : memref<8x64xf32, #tpu.memory_space<vmem>>, vector<8x64xf32>
      %57 = arith.mulf %43, %56 : vector<8x64xf32>
      %58 = arith.addf %55, %57 : vector<8x64xf32>
      %c0_43 = arith.constant 0 : index
      %c0_44 = arith.constant 0 : index
      %59 = vector.load %arg16[%c0_43, %c0_44] : memref<8x64xf32, #tpu.memory_space<vmem>>, vector<8x64xf32>
      tpu.vector_store %arg16[%c0_43, %c0_44], %58 {strides = array<i32>} : memref<8x64xf32, #tpu.memory_space<vmem>>, vector<8x64xf32>,
      %60 = arith.truncf %58 : vector<8x64xf32> to vector<8x64xbf16>
      %c0_45 = arith.constant 0 : index
      %c0_46 = arith.constant 0 : index
      %61 = vector.load %arg17[%c0_45, %c0_46] : memref<8x64xbf16, #tpu.memory_space<vmem>>, vector<8x64xbf16>
      tpu.vector_store %arg17[%c0_45, %c0_46], %60 {strides = array<i32>} : memref<8x64xbf16, #tpu.memory_space<vmem>>, vector<8x64xbf16>,
    } else {
    }
    %c0 = arith.constant 0 : index
    %c0_1 = arith.constant 0 : index
    %3 = vector.load %arg17[%c0, %c0_1] : memref<8x64xbf16, #tpu.memory_space<vmem>>, vector<8x64xbf16>
    %c0_2 = arith.constant 0 : index
    %c0_3 = arith.constant 0 : index
    %4 = vector.load %arg13[%c0_2, %c0_3] : memref<64x32xbf16, #tpu.memory_space<vmem>>, vector<64x32xbf16>
    %cst = arith.constant dense<0.000000e+00> : vector<8x32xf32>
    %5 = tpu.matmul %3, %4, %cst {dimension_numbers = #tpu.dot_dimension_numbers<[1], [0], [0], [1], [0, 0, 1, 1], [], []>} : vector<8x64xbf16>, vector<64x32xbf16>, vector<8x32xf32> -> vector<8x32xf32>
    %c0_4 = arith.constant 0 : index
    %c0_5 = arith.constant 0 : index
    %6 = vector.load %arg14[%c0_4, %c0_5] : memref<1x32xf32, #tpu.memory_space<vmem>>, vector<1x32xf32>
    %7 = vector.broadcast %6 : vector<1x32xf32> to vector<8x32xf32>
    %8 = arith.addf %5, %7 : vector<8x32xf32>
    %c0_6 = arith.constant 0 : index
    %c0_7 = arith.constant 0 : index
    %9 = vector.load %arg15[%c0_6, %c0_7] : memref<8x32xf32, #tpu.memory_space<vmem>>, vector<8x32xf32>
    tpu.vector_store %arg15[%c0_6, %c0_7], %8 {strides = array<i32>} : memref<8x32xf32, #tpu.memory_space<vmem>>, vector<8x32xf32>,
    return
  }
  func.func @transform_0(%arg0: i32) -> (i32, i32) {
    %c0_i32 = arith.constant 0 : i32
    %c0_i32_0 = arith.constant 0 : i32
    %c0_i32_1 = arith.constant 0 : i32
    return %c0_i32, %c0_i32_0 : i32, i32
  }
  func.func @transform_1(%arg0: i32) -> (i32, i32) {
    %c0_i32 = arith.constant 0 : i32
    %c0_i32_0 = arith.constant 0 : i32
    %c0_i32_1 = arith.constant 0 : i32
    return %c0_i32, %c0_i32_0 : i32, i32
  }
  func.func @transform_2(%arg0: i32) -> (i32, i32) {
    %c0_i32 = arith.constant 0 : i32
    %c0_i32_0 = arith.constant 0 : i32
    %c0_i32_1 = arith.constant 0 : i32
    return %c0_i32, %c0_i32_0 : i32, i32
  }
  func.func @transform_3(%arg0: i32) -> (i32, i32) {
    %c0_i32 = arith.constant 0 : i32
    %c0_i32_0 = arith.constant 0 : i32
    %c0_i32_1 = arith.constant 0 : i32
    return %c0_i32, %c0_i32_0 : i32, i32
  }
  func.func @transform_4(%arg0: i32) -> (i32, i32) {
    %c0_i32 = arith.constant 0 : i32
    %c0_i32_0 = arith.constant 0 : i32
    %c0_i32_1 = arith.constant 0 : i32
    return %c0_i32, %c0_i32_0 : i32, i32
  }
  func.func @transform_5(%arg0: i32) -> (i32, i32) {
    %c0_i32 = arith.constant 0 : i32
    %c0_i32_0 = arith.constant 0 : i32
    %c0_i32_1 = arith.constant 0 : i32
    return %c0_i32, %c0_i32_0 : i32, i32
  }
  func.func @transform_6(%arg0: i32) -> (i32, i32) {
    %c0_i32 = arith.constant 0 : i32
    %c0_i32_0 = arith.constant 0 : i32
    %c0_i32_1 = arith.constant 0 : i32
    return %c0_i32, %c0_i32_0 : i32, i32
  }
  func.func @transform_7(%arg0: i32) -> (i32, i32) {
    %c0_i32 = arith.constant 0 : i32
    %c0_i32_0 = arith.constant 0 : i32
    %c0_i32_1 = arith.constant 0 : i32
    return %c0_i32, %c0_i32_0 : i32, i32
  }
  func.func @transform_8(%arg0: i32) -> (i32, i32) {
    %c0_i32 = arith.constant 0 : i32
    %c0_i32_0 = arith.constant 0 : i32
    %c0_i32_1 = arith.constant 0 : i32
    return %c0_i32, %c0_i32_0 : i32, i32
  }
  func.func @transform_9(%arg0: i32) -> (i32, i32) {
    %c0_i32 = arith.constant 0 : i32
    %c0_i32_0 = arith.constant 0 : i32
    %c0_i32_1 = arith.constant 0 : i32
    return %c0_i32, %c0_i32_0 : i32, i32
  }
  func.func @transform_10(%arg0: i32) -> (i32, i32) {
    %c0_i32 = arith.constant 0 : i32
    %c0_i32_0 = arith.constant 0 : i32
    %c0_i32_1 = arith.constant 0 : i32
    return %c0_i32, %c0_i32_0 : i32, i32
  }
  func.func @transform_11(%arg0: i32) -> (i32, i32) {
    %c0_i32 = arith.constant 0 : i32
    %c0_i32_0 = arith.constant 0 : i32
    %c0_i32_1 = arith.constant 0 : i32
    return %c0_i32, %c0_i32_0 : i32, i32
  }
  func.func @transform_12(%arg0: i32) -> (i32, i32) {
    %c0_i32 = arith.constant 0 : i32
    %c0_i32_0 = arith.constant 0 : i32
    return %c0_i32, %arg0 : i32, i32
  }
  func.func @transform_13(%arg0: i32) -> (i32, i32) {
    %c0_i32 = arith.constant 0 : i32
    %c0_i32_0 = arith.constant 0 : i32
    return %c0_i32, %arg0 : i32, i32
  }
  func.func @transform_14(%arg0: i32) -> (i32, i32) {
    %c0_i32 = arith.constant 0 : i32
    %c0_i32_0 = arith.constant 0 : i32
    return %c0_i32, %arg0 : i32, i32
  }
  func.func @transform_15(%arg0: i32) -> (i32, i32) {
    %c0_i32 = arith.constant 0 : i32
    %c0_i32_0 = arith.constant 0 : i32
    %c0_i32_1 = arith.constant 0 : i32
    return %c0_i32, %c0_i32_0 : i32, i32
  }
}

</mosaic_0001>

<bundles_post_ra>
// kernel: tpu_custom_call.1
= control target key start
LH: loop header
LB: loop body
LE: loop exit
PB: predicated region body
PF: predicated region fallthrough
CT: control target
= control target key end

     0   :  { %21 = vsyncpa [#allocation4], 0  ;;  %s1277_s0 = inlined_call_operand.hbm [shape: f32[8,32], index: 0, kind: input, shape index: {}]   ;;  %s1278_s1 = inlined_call_operand.hbm [shape: f32[8,64], index: 1, kind: input, shape index: {}]   ;;  %s1279_s2 = inlined_call_operand.vmem [shape: bf16[32,64], index: 2, kind: input, shape index: {}]   ;;  %s1280_s3 = inlined_call_operand.hbm [shape: bf16[32,64], index: 3, kind: input, shape index: {}]   ;;  %s1281_s4 = inlined_call_operand.hbm [shape: bf16[32,64], index: 4, kind: input, shape index: {}]   ;;  %s1282_s5 = inlined_call_operand.vmem [shape: bf16[64,64], index: 5, kind: input, shape index: {}]   ;;  %s1283_s6 = inlined_call_operand.hbm [shape: bf16[64,64], index: 6, kind: input, shape index: {}]   ;;  %s1284_s7 = inlined_call_operand.hbm [shape: bf16[64,64], index: 7, kind: input, shape index: {}]   ;;  %s1285_s8 = inlined_call_operand.vmem [shape: f32[1,64], index: 8, kind: input, shape index: {}]   ;;  %s1286_s9 = inlined_call_operand.vmem [shape: f32[1,64], index: 9, kind: input, shape index: {}]   ;;  %s1287_s10 = inlined_call_operand.vmem [shape: f32[1,64], index: 10, kind: input, shape index: {}]   ;;  %s1288_s11 = inlined_call_operand.vmem [shape: f32[1,64], index: 11, kind: input, shape index: {}]   ;;  %s1289_s12 = inlined_call_operand.vmem [shape: bf16[64,32], index: 12, kind: input, shape index: {}]   ;;  %s1290_s13 = inlined_call_operand.vmem [shape: f32[1,32], index: 13, kind: input, shape index: {}]   ;;  %s1291_s14 = inlined_call_operand.hbm [shape: f32[8,32], index: 14, kind: output, shape index: {0}]   ;;  %s1292_s15 = inlined_call_operand.hbm [shape: f32[8,64], index: 15, kind: output, shape index: {1}]  }
   0x1   :  { %22 = vsyncpa [#allocation7], 0 }
   0x2   :  { %23 = vsyncpa [#allocation10], 0 }
   0x3   :  { %24 = vsyncpa [#allocation13], 0 }
   0x4   :  { %25 = vsyncpa [#allocation5], 0 }
   0x5   :  { %26 = vsyncpa [#allocation16], 0  ;;  %s1054_s18 = smov [#allocation6]  }
   0x6   :  { %s43_s19 = sshll.u32 %s1054_s18, 4  ;;  %s44_s19 = int_to_ptr.vmem [resolvable:$true] %s43_s19 }
   0x7   :  { %s890_s20 = scalar_lea.vmem %s44_s19, 128  ;;  %p895_p1 = scmp.lt.s32.totalorder %s44_s19, %s44_s19 }
   0x8   :  { %p891_p0 = scmp.ne.s32.totalorder %s44_s19, %s890_s20  ;;  %p896_p2 = scmp.lt.s32.totalorder %s890_s20, %s890_s20 }
   0xa   :  { %p897_p3 = por %p896_p2, %p895_p1 }
   0xc   :  { %p898_p4 = pnand %p897_p3, %p891_p0 }
   0xe   :  { %901 = shalt.err (!%p898_p4)
}
   0xf   :  { %46 = dma.hbm_to_vmem [thread:$0]  %s1278_s1, 128, %s44_s19, [#allocation7]  }
  0x10   :  { %s1055_s23 = smov [#allocation9]   ;;  %s1056_s25 = smov [#allocation3]  }
  0x11   :  { %s66_s24 = sshll.u32 %s1055_s23, 4  ;;  %s33_s26 = sshll.u32 %s1056_s25, 4  ;;  %s67_s24 = int_to_ptr.vmem [resolvable:$true] %s66_s24  ;;  %s34_s26 = int_to_ptr.vmem [resolvable:$true] %s33_s26 }
  0x12   :  { %s910_s27 = scalar_lea.vmem %s67_s24, 256  ;;  %p915_p6 = scmp.lt.s32.totalorder %s67_s24, %s67_s24 }
  0x13   :  { %p911_p5 = scmp.ne.s32.totalorder %s67_s24, %s910_s27  ;;  %p916_p7 = scmp.lt.s32.totalorder %s910_s27, %s910_s27 }
  0x15   :  { %p917_p8 = por %p916_p7, %p915_p6 }
  0x17   :  { %p918_p9 = pnand %p917_p8, %p911_p5 }
  0x19   :  { %921 = shalt.err (!%p918_p9)
}
  0x1a   :  { %s1057_s28 = smov 64   ;;  %s1058_s29 = smov 4  }
  0x1b   :  { %72 = dma.hbm_to_vmem [thread:$0]  %s1281_s4, 256, %s67_s24, [#allocation10], %s1057_s28, %s1057_s28, %s1058_s29  }
  0x1c   :  { %s930_s1 = scalar_lea.vmem %s34_s26, 128  ;;  %p935_p11 = scmp.lt.s32.totalorder %s34_s26, %s34_s26 }
  0x1d   :  { %p931_p10 = scmp.ne.s32.totalorder %s34_s26, %s930_s1  ;;  %p936_p12 = scmp.lt.s32.totalorder %s930_s1, %s930_s1 }
  0x1f   :  { %p937_p13 = por %p936_p12, %p935_p11 }
  0x21   :  { %p938_p0 = pnand %p937_p13, %p931_p10 }
  0x23   :  { %941 = shalt.err (!%p938_p0)
}
  0x24   :  { %36 = dma.hbm_to_vmem [thread:$0]  %s1277_s0, 128, %s34_s26, [#allocation4]  }
  0x25   :  { %s1059_s19 = smov [#allocation8]   ;;  %s1060_s21 = smov [#allocation11]  }
  0x26   :  { %s54_s20 = sshll.u32 %s1059_s19, 4  ;;  %s80_s22 = sshll.u32 %s1060_s21, 4  ;;  %s55_s20 = int_to_ptr.vmem [resolvable:$true] %s54_s20  ;;  %s81_s22 = int_to_ptr.vmem [resolvable:$true] %s80_s22 }
  0x27   :  { %s950_s23 = scalar_lea.vmem %s55_s20, 256  ;;  %p955_p2 = scmp.lt.s32.totalorder %s55_s20, %s55_s20 }
  0x28   :  { %p951_p1 = scmp.ne.s32.totalorder %s55_s20, %s950_s23  ;;  %p956_p3 = scmp.lt.s32.totalorder %s950_s23, %s950_s23 }
  0x2a   :  { %p957_p4 = por %p956_p3, %p955_p2 }
  0x2c   :  { %p958_p5 = pnand %p957_p4, %p951_p1 }
  0x2e   :  { %961 = shalt.err (!%p958_p5)
}
  0x2f   :  { %60 = dma.hbm_to_vmem [thread:$0]  %s1280_s3, 256, %s55_s20, [#allocation7], %s1057_s28, %s1057_s28, %s1058_s29  }
  0x30   :  { %s970_s0 = scalar_lea.vmem %s81_s22, 512  ;;  %p975_p7 = scmp.lt.s32.totalorder %s81_s22, %s81_s22 }
  0x31   :  { %p971_p6 = scmp.ne.s32.totalorder %s81_s22, %s970_s0  ;;  %p976_p8 = scmp.lt.s32.totalorder %s970_s0, %s970_s0 }
  0x33   :  { %p977_p9 = por %p976_p8, %p975_p7 }
  0x35   :  { %p978_p10 = pnand %p977_p9, %p971_p6 }
  0x37   :  { %981 = shalt.err (!%p978_p10)
}
  0x38   :  { %86 = dma.hbm_to_vmem [thread:$0]  %s1283_s6, 512, %s81_s22, [#allocation10], %s1057_s28, %s1057_s28, %s1058_s29  }
  0x39   :  { %s1061_s27 = smov [#allocation12]  }
  0x3a   :  { %s92_s30 = sshll.u32 %s1061_s27, 4  ;;  %s93_s30 = int_to_ptr.vmem [resolvable:$true] %s92_s30 }
  0x3b   :  { %s990_s16 = scalar_lea.vmem %s93_s30, 512  ;;  %p995_p12 = scmp.lt.s32.totalorder %s93_s30, %s93_s30 }
  0x3c   :  { %p991_p11 = scmp.ne.s32.totalorder %s93_s30, %s990_s16  ;;  %p996_p13 = scmp.lt.s32.totalorder %s990_s16, %s990_s16 }
  0x3e   :  { %p997_p0 = por %p996_p13, %p995_p12 }
  0x40   :  { %p998_p1 = pnand %p997_p0, %p991_p11 }
  0x42   :  { %1001 = shalt.err (!%p998_p1)
}
  0x43   :  { %98 = dma.hbm_to_vmem [thread:$0]  %s1284_s7, 512, %s93_s30, [#allocation13], %s1057_s28, %s1057_s28, %s1058_s29  }
  0x44   :  { %1042 = dma.done.wait [#allocation4], 128  }
  0x45   :  { %1043 = vsyncadd [#allocation4], 4294967168 }
  0x46   :  { %1044 = dma.done.wait [#allocation7], 384  }
  0x47   :  { %1045 = vsyncadd [#allocation7], 4294966912 }
  0x48   :  { %1046 = dma.done.wait [#allocation10], 768  }
  0x49   :  { %1047 = vsyncadd [#allocation10], 4294966528 }
  0x4a   :  { %1048 = dma.done.wait [#allocation13], 512  }
  0x4b   :  { %1049 = vsyncadd [#allocation13], 4294966784  ;;  %v1062_v0 = vmov 0.0   ;;  %vm1063_vm0 = vmmov 0   ;;  %v850_v1 = vld [vmem:[%s1282_s5 + $0x18] sm:$0xff]   ;;  %v851_v2 = vld [vmem:[%s1282_s5 + $0x10] sm:$0xff]  }
  0x4c   :  { %766 = vmatprep.subr.bf16.mxu0 %v1062_v0  ;;  %778 = vmatprep.subr.bf16.mxu1 %v1062_v0  ;;  %v853_v3 = vld [vmem:[#allocation11 + $0x18] sm:$0xff]   ;;  %v855_v4 = vld [vmem:[#allocation11 + $0x10] sm:$0xff]   ;;  %v857_v6 = vld [vmem:[#allocation11 + $0x8] sm:$0xff]   ;;  %vm182_vm1 = vcmask 523264   ;;  %vm318_vm2 = vcmask 261120   ;;  %vm581_vm3 = vcmask 519168  }
  0x4d   :  { %774 = vmatprep.mubr.msk.bf16.mxu0 %vm1063_vm0, %v1062_v0  ;;  %786 = vmatprep.mubr.msk.bf16.mxu1 %vm1063_vm0, %v1062_v0  ;;  %v852_v5 = vld [vmem:[%s1282_s5 + $0x8] sm:$0xff]   ;;  %v854_v7 = vld [vmem:[%s1282_s5] sm:$0xff]   ;;  %v859_v10 = vld [vmem:[#allocation11] sm:$0xff]  }
  0x4e   :  { %767 = vmatpush3.bf16.msra.mxu0 %v850_v1  ;;  %779 = vmatpush3.bf16.msra.mxu1 %v853_v3  ;;  %v1197_v8 = vld [vmem:[#allocation6] sm:$0xff]  ;;  %v858_v12 = vld [vmem:[%s1279_s2] sm:$0xff]   ;;  %v861_v16 = vld [vmem:[#allocation8] sm:$0xff]  }
  0x4f   :  { %768 = vmatprep.subr.bf16.mxu0 %v1062_v0  ;;  %780 = vmatprep.subr.bf16.mxu1 %v1062_v0  ;;  %v137_v9 = vpack.c.bf16 %v1197_v8, %v1197_v8  ;;  %v856_v11 = vld [vmem:[%s1279_s2 + $0x8] sm:$0xff]   ;;  %v860_v13 = vld [vmem:[#allocation8 + $0x8] sm:$0xff]   ;;  %v866_v22 = vld [vmem:[#allocation12] sm:$0xff]  }
  0x50   :  { %v134_v14 = vld [vmem:[#allocation3] sm:$0xff]  ;;  %v865_v17 = vld [vmem:[#allocation9 + $0x8] sm:$0xff]   ;;  %v864_v21 = vld [vmem:[#allocation12 + $0x8] sm:$0xff]  }
  0x51   :  { %v135_v15 = vpack.c.bf16 %v134_v14, %v134_v14  ;;  %v862_v18 = vld [vmem:[#allocation12 + $0x18] sm:$0xff]   ;;  %v867_v19 = vld [vmem:[#allocation9] sm:$0xff]   ;;  %v868_v23 = vld [vmem:[%s1289_s12 + $0x18] sm:$0xff]  }
  0x52   :  { %769 = vmatpush3.bf16.msra.mxu0 %v851_v2  ;;  %781 = vmatpush3.bf16.msra.mxu1 %v855_v4  ;;  %v863_v20 = vld [vmem:[#allocation12 + $0x10] sm:$0xff]   ;;  %v869_v24 = vld [vmem:[%s1289_s12 + $0x10] sm:$0xff]   ;;  %v714_v35 = vld [vmem:[%s1285_s8] ss:$0 sm:$0xff] }
  0x53   :  { %770 = vmatprep.subr.bf16.mxu0 %v1062_v0  ;;  %782 = vmatprep.subr.bf16.mxu1 %v1062_v0  ;;  %v870_v25 = vld [vmem:[%s1289_s12 + $0x8] sm:$0xff]   ;;  %v871_v26 = vld [vmem:[%s1289_s12] sm:$0xff]  }
  0x54   :  { %v719_v46 = vld [vmem:[%s1286_s9] ss:$0 sm:$0xff] }
  0x55   :  { %v725_v62 = vld [vmem:[%s1288_s11] ss:$0 sm:$0xff] }
  0x56   :  { %771 = vmatpush3.bf16.msra.mxu0 %v852_v5  ;;  %783 = vmatpush3.bf16.msra.mxu1 %v857_v6  ;;  %v721_v63 = vld [vmem:[%s1287_s10] ss:$0 sm:$0xff]  ;;  %s1064_s10 = smov [#allocation15]  }
  0x57   :  { %772 = vmatprep.subr.bf16.mxu0 %v1062_v0  ;;  %784 = vmatprep.subr.bf16.mxu1 %v1062_v0  ;;  %s685_s11 = sshll.u32 %s1064_s10, 4  ;;  %s686_s11 = int_to_ptr.vmem [resolvable:$true] %s685_s11 }
  0x58   :  { %s1002_s28 = scalar_lea.vmem %s686_s11, 128  ;;  %p1007_p3 = scmp.lt.s32.totalorder %s686_s11, %s686_s11 }
  0x59   :  { %p1003_p2 = scmp.ne.s32.totalorder %s686_s11, %s1002_s28  ;;  %p1008_p4 = scmp.lt.s32.totalorder %s1002_s28, %s1002_s28 }
  0x5a   :  { %773 = vmatpush3.bf16.msra.mxu0 %v854_v7  ;;  %785 = vmatpush3.bf16.msra.mxu1 %v859_v10 }
  0x5b   :  { %790 = vmatprep.subr.bf16.mxu0 %v1062_v0  ;;  %798 = vmatprep.subr.bf16.mxu1 %v1062_v0  ;;  %p1009_p5 = por %p1008_p4, %p1007_p3 }
  0x5d   :  { %775 = vmatmul.mubr.msk.bf16.vlgmr.msra.gmra.mxu0 %vm182_vm1, %v137_v9  ;;  %787 = vmatmul.mubr.msk.bf16.vlgmr.msra.gmra.mxu1 %vm182_vm1, %v137_v9  ;;  %p1010_p6 = pnand %p1009_p5, %p1003_p2 }
  0x5e   :  { %791 = vmatpush3.bf16.msra.mxu0 %v856_v11  ;;  %794 = vmatprep.mubr.msk.bf16.mxu0 %vm1063_vm0, %v1062_v0 }
  0x5f   :  { %792 = vmatprep.subr.bf16.mxu0 %v1062_v0  ;;  %799 = vmatpush3.bf16.msra.mxu1 %v860_v13 }
  0x60   :  { %802 = vmatprep.mubr.msk.bf16.mxu1 %vm1063_vm0, %v1062_v0  ;;  %800 = vmatprep.subr.bf16.mxu1 %v1062_v0 }
  0x62   :  { %793 = vmatpush3.bf16.msra.mxu0 %v858_v12 }
  0x63   :  { %806 = vmatprep.subr.bf16.mxu0 %v1062_v0  ;;  %801 = vmatpush3.bf16.msra.mxu1 %v861_v16 }
  0x64   :  { %814 = vmatprep.subr.bf16.mxu1 %v1062_v0 }
  0x65   :  { %795 = vmatmul.mubr.msk.bf16.vlgmr.msra.gmra.mxu0 %vm318_vm2, %v135_v15 }
  0x66   :  { %807 = vmatpush3.bf16.msra.mxu0 %v865_v17  ;;  %810 = vmatprep.mubr.msk.bf16.mxu0 %vm1063_vm0, %v1062_v0 }
  0x67   :  { %808 = vmatprep.subr.bf16.mxu0 %v1062_v0  ;;  %803 = vmatmul.mubr.msk.bf16.vlgmr.msra.gmra.mxu1 %vm318_vm2, %v135_v15 }
  0x68   :  { %815 = vmatpush3.bf16.msra.mxu1 %v862_v18  ;;  %822 = vmatprep.mubr.msk.bf16.mxu1 %vm1063_vm0, %v1062_v0 }
  0x69   :  { %816 = vmatprep.subr.bf16.mxu1 %v1062_v0 }
  0x6a   :  { %809 = vmatpush3.bf16.msra.mxu0 %v867_v19 }
  0x6b   :  { %826 = vmatprep.subr.bf16.mxu0 %v1062_v0 }
  0x6c   :  { %817 = vmatpush3.bf16.msra.mxu1 %v863_v20 }
  0x6d   :  { %811 = vmatmul.mubr.msk.bf16.vlgmr.msra.gmra.mxu0 %vm318_vm2, %v135_v15  ;;  %818 = vmatprep.subr.bf16.mxu1 %v1062_v0 }
  0x6e   :  { %834 = vmatprep.mubr.msk.bf16.mxu0 %vm1063_vm0, %v1062_v0  ;;  %827 = vmatpush3.bf16.msra.mxu0 %v868_v23 }
  0x6f   :  { %828 = vmatprep.subr.bf16.mxu0 %v1062_v0 }
  0x70   :  { %819 = vmatpush3.bf16.msra.mxu1 %v864_v21 }
  0x71   :  { %820 = vmatprep.subr.bf16.mxu1 %v1062_v0 }
  0x72   :  { %829 = vmatpush3.bf16.msra.mxu0 %v869_v24 }
  0x73   :  { %830 = vmatprep.subr.bf16.mxu0 %v1062_v0 }
  0x74   :  { %821 = vmatpush3.bf16.msra.mxu1 %v866_v22 }
  0x76   :  { %831 = vmatpush3.bf16.msra.mxu0 %v870_v25 }
  0x77   :  { %823 = vmatmul.mubr.msk.bf16.vlgmr.msra.gmra.mxu1 %vm182_vm1, %v137_v9  ;;  %832 = vmatprep.subr.bf16.mxu0 %v1062_v0 }
  0x7a   :  { %833 = vmatpush3.bf16.msra.mxu0 %v871_v26 }
 0x11d   :  { %v220_v27 = vpop.f32.mrf.mxu0  ;;  %v292_v29 = vpop.f32.mrf.mxu1 }
 0x11f   :  { %v776_v28 = vpop.f32.mrf.mxu0  ;;  %v788_v31 = vpop.f32.mrf.mxu1 }
 0x121   :  { %v223_v30 = vpop.f32.mrf.mxu0  ;;  %v295_v33 = vpop.f32.mrf.mxu1 }
 0x123   :  { %v777_v32 = vpop.f32.mrf.mxu0  ;;  %v789_v37 = vpop.f32.mrf.mxu1 }
 0x125   :  { %v356_v34 = vpop.f32.mrf.mxu0 }
 0x126   :  { %v357_v36 = vadd.f32 %v356_v34, %v220_v27 }
 0x127   :  { %v796_v38 = vpop.f32.mrf.mxu0  ;;  %v422_v40 = vpop.f32.mrf.mxu1 }
 0x128   :  { %v369_v39 = vadd.f32 %v714_v35, %v357_v36  ;;  %v423_v43 = vadd.f32 %v422_v40, %v292_v29 }
 0x129   :  { %v359_v41 = vpop.f32.mrf.mxu0  ;;  %v804_v44 = vpop.f32.mrf.mxu1 }
 0x12a   :  { %v715_v42 = vmul.f32 -1.442695, %v369_v39  ;;  %v435_v49 = vadd.f32 %v719_v46, %v423_v43 }
 0x12b   :  { %v797_v45 = vpop.f32.mrf.mxu0  ;;  %v425_v47 = vpop.f32.mrf.mxu1 }
 0x12c   :  { %872 = vpow2.f32 %v715_v42  ;;  %v720_v53 = vmul.f32 -1.442695, %v435_v49 }
 0x12d   :  { %v495_v48 = vpop.f32.mrf.mxu0  ;;  %v805_v50 = vpop.f32.mrf.mxu1 }
 0x12e   :  { %874 = vpow2.f32 %v720_v53  ;;  %v496_v2 = vadd.f32 %v721_v63, %v495_v48 }
 0x12f   :  { %v812_v51 = vpop.f32.mrf.mxu0 }
 0x131   :  { %v498_v52 = vpop.f32.mrf.mxu0 }
 0x133   :  { %v813_v54 = vpop.f32.mrf.mxu0 }
 0x137   :  { %v566_v55 = vpop.f32.mrf.mxu1 }
 0x138   :  { %v567_v1 = vadd.f32 %v725_v62, %v566_v55 }
 0x139   :  { %v873_v56 = vpop.eup %872  ;;  %v824_v58 = vpop.f32.mrf.mxu1 }
 0x13a   :  { %v373_v57 = vadd.f32 1.0, %v873_v56 }
 0x13b   :  { %v569_v59 = vpop.f32.mrf.mxu1  ;;  %v875_v61 = vpop.eup %874 }
 0x13c   :  { %876 = vrcp.f32 %v373_v57  ;;  %v439_v0 = vadd.f32 1.0, %v875_v61 }
 0x13d   :  { %v825_v60 = vpop.f32.mrf.mxu1 }
 0x13e   :  { %878 = vrcp.f32 %v439_v0 }
 0x149   :  { %v877_v3 = vpop.eup %876 }
 0x14a   :  { %v572_v4 = vmul.f32 %v877_v3, %v567_v1 }
 0x14b   :  { %v879_v6 = vpop.eup %878 }
 0x14c   :  { %v573_v5 = vadd.f32 %v572_v4, %v496_v2  ;;  %v575_v7 = vsub.f32 1.0, %v879_v6  ;;  %v577_v11 = vmul.f32 %v879_v6, %v1197_v8 }
 0x14e   :  { %880 = vtanh.f32 %v573_v5 }
 0x15b   :  { %v881_v9 = vpop.eup %880 }
 0x15c   :  { %v576_v10 = vmul.f32 %v881_v9, %v575_v7 }
 0x15e   :  { %v578_v12 = vadd.f32 %v577_v11, %v576_v10 }
 0x160   :  { %v580_v13 = vpack.c.bf16 %v578_v12, %v578_v12  ;;  %579 = vst.msk [vmem:[#allocation15] sm:$0xff] %vm182_vm1, %v578_v12 }
 0x162   :  { %582 = vst.msk [vmem:[#allocation2] sm:$0xf] %vm581_vm3, %v580_v13 }
 0x169   :  { %v583_v14 = vld [vmem:[#allocation2] sm:$0xf] }
 0x16a   :  { %835 = vmatmul.mubr.msk.bf16.vlgmr.msra.gmra.mxu0 %vm182_vm1, %v583_v14 }
 0x16b   :  { %1013 = shalt.err (!%p1010_p6)
}
 0x16c   :  { %688 = dma.vmem_to_hbm [thread:$0]  %s686_s11, 128, %s1292_s15, [#allocation16]   ;;  %v731_v8 = vld [vmem:[%s1290_s13] ss:$0 sm:$0xff] }
 0x16d   :  { %s1065_s20 = smov [#allocation14]  }
 0x16e   :  { %s675_s21 = sshll.u32 %s1065_s20, 4  ;;  %s676_s21 = int_to_ptr.vmem [resolvable:$true] %s675_s21 }
 0x16f   :  { %s1022_s22 = scalar_lea.vmem %s676_s21, 128  ;;  %p1027_p8 = scmp.lt.s32.totalorder %s676_s21, %s676_s21 }
 0x170   :  { %p1023_p7 = scmp.ne.s32.totalorder %s676_s21, %s1022_s22  ;;  %p1028_p9 = scmp.lt.s32.totalorder %s1022_s22, %s1022_s22 }
 0x172   :  { %p1029_p10 = por %p1028_p9, %p1027_p8 }
 0x174   :  { %p1030_p11 = pnand %p1029_p10, %p1023_p7 }
 0x22a   :  { %v661_v15 = vpop.f32.mrf.mxu0 }
 0x22b   :  { %v662_v16 = vadd.f32 %v731_v8, %v661_v15 }
 0x22c   :  { %v836_v17 = vpop.f32.mrf.mxu0 }
 0x22d   :  { %668 = vst.msk [vmem:[#allocation14] sm:$0xff] %vm318_vm2, %v662_v16 }
 0x22e   :  { %v664_v18 = vpop.f32.mrf.mxu0 }
 0x22f   :  { %1033 = shalt.err (!%p1030_p11)
}
 0x230   :  { %678 = dma.vmem_to_hbm [thread:$0]  %s676_s21, 128, %s1291_s14, [#allocation5]   ;;  %v837_v19 = vpop.f32.mrf.mxu0 }
 0x231   :  { %1050 = dma.done.wait [#allocation5], 128  }
 0x232   :  { %1051 = vsyncadd [#allocation5], 4294967168 }
 0x233   :  { %1052 = dma.done.wait [#allocation16], 128  }
 0x234   :  { %1053 = vsyncadd [#allocation16], 4294967168 }
 0x235   :  { %695 = vsyncpa [#allocation4], 1 }
 0x236   :  { %696 = vsyncpa [#allocation7], 1 }
 0x237   :  { %697 = vsyncpa [#allocation10], 1 }
 0x238   :  { %698 = vsyncpa [#allocation13], 1 }
 0x239   :  { %699 = vsyncpa [#allocation5], 1 }
 0x23a   :  { %700 = vsyncpa [#allocation16], 1 }

</bundles_post_ra>
